<compile_context>
chip_gen: v7x
topology: tpu7x:2x2x1
jax: 0.10.0
libtpu: 0.0.40
codegen_flags: <defaults>
</compile_context>

<pallas_src>
import functools

import jax
import jax.numpy as jnp
from jax.experimental import pallas as pl
from jax.experimental.pallas import tpu as pltpu


def _round_up(x, m):
    return (x + m - 1) // m * m


# ----------------------------- Pallas kernel -----------------------------

def rsn_encoder_kernel(x_ref, wconv_ref, bconv_ref, wlin_ref, blin_ref, out_ref,
                       *, seq_len, pool_rows):
    """Conv1d(k=3, pad=1) + ReLU + max-pool(L) + Linear for one batch tile.

    x_ref:     (Bt, Lp2, D)  bf16  conv-padded activations per sequence:
                                   row 0 = left zero pad, rows 1..L = data, rest = zero
    wconv_ref: (3, D, Cp)    bf16  conv taps (tap k applies to padded row l + k)
    bconv_ref: (1, Cp)       f32
    wlin_ref:  (Cp, OUTP)    bf16
    blin_ref:  (1, OUTP)     f32
    out_ref:   (Bt, OUTP)    f32
    """
    Bt, Lp2, D = x_ref.shape
    Cp = wconv_ref.shape[2]
    Lp = pool_rows                       # multiple of 8, seq_len <= Lp <= Lp2 - 2

    # Collapse (Bt, Lp2) into the MXU M dim.  Lp2 is a multiple of 16, so this is a
    # pure layout no-op for the (16, 128)-tiled bf16 value (no VMEM copy).
    x2 = x_ref[...].reshape(Bt * Lp2, D)

    # One full-height MXU matmul per conv tap (K = D), accumulating in f32.
    y0 = jnp.dot(x2, wconv_ref[0], preferred_element_type=jnp.float32)
    y1 = jnp.dot(x2, wconv_ref[1], preferred_element_type=jnp.float32)
    y2 = jnp.dot(x2, wconv_ref[2], preferred_element_type=jnp.float32)
    y1 = y1 + bconv_ref[...]             # conv bias: lands on every output row exactly once

    y0 = y0.reshape(Bt, Lp2, Cp)         # f32, Lp2 % 8 == 0 -> layout no-op
    y1 = y1.reshape(Bt, Lp2, Cp)
    y2 = y2.reshape(Bt, Lp2, Cp)

    # Conv1d(kernel=3, padding=1): conv[l] = y0[l] + y1[l+1] + y2[l+2]
    # (static f32 row slices at sublane offsets 0/1/2; aligned by cheap 32-bit shifts)
    conv = y0[:, 0:Lp, :] + y1[:, 1:Lp + 1, :] + y2[:, 2:Lp + 2, :]
    conv = jnp.maximum(conv, 0.0)        # ReLU, (Bt, Lp, Cp)

    if Lp != seq_len:
        # rows seq_len..Lp-1 are alignment padding; keep them out of the max-pool
        lidx = jax.lax.broadcasted_iota(jnp.int32, (1, Lp, 1), 1)
        conv = jnp.where(lidx >= seq_len, jnp.float32(-1e30), conv)

    pooled = jnp.max(conv, axis=1)       # (Bt, Cp) f32 — max-pool over the length dim

    out = jnp.dot(pooled.astype(jnp.bfloat16), wlin_ref[...],
                  preferred_element_type=jnp.float32) + blin_ref[...]
    out_ref[...] = out                   # (Bt, OUTP) f32, lane-dense unmasked store


def rsn_encode(cnn_input, conv_w, conv_b, lin_w, lin_b, *, block_b=8):
    """cnn_input (B, L, D) float32 -> encoded (B, OUT) float32 (RSN's CNN encoder)."""
    B, L, D = cnn_input.shape
    KT, Dw, C = conv_w.shape
    assert KT == 3 and Dw == D
    OUT = lin_w.shape[1]

    Bt = block_b                               # batch tile (>= 8 sublanes per output store)
    Bp = _round_up(B, Bt)
    Lp = _round_up(L, 8)                       # pooled rows (f32 sublane tile = 8)
    Lp2 = _round_up(Lp + 2, 16)                # conv-padded rows (bf16 sublane tile = 16)
    Cp = _round_up(C, 128)                     # lane-dense conv channels
    OUTP = _round_up(OUT, 128)                 # lane-dense output width

    # Layout plumbing (wrapper side): conv zero pad + alignment pad + bf16 casts.
    x = jnp.pad(cnn_input, ((0, Bp - B), (1, Lp2 - L - 1), (0, 0))).astype(jnp.bfloat16)
    wconv = jnp.pad(conv_w, ((0, 0), (0, 0), (0, Cp - C))).astype(jnp.bfloat16)
    bconv = jnp.pad(conv_b.reshape(1, -1).astype(jnp.float32), ((0, 0), (0, Cp - C)))
    wlin = jnp.pad(lin_w, ((0, Cp - C), (0, OUTP - OUT))).astype(jnp.bfloat16)
    blin = jnp.pad(lin_b.reshape(1, -1).astype(jnp.float32), ((0, 0), (0, OUTP - OUT)))

    grid = (Bp // Bt,)
    flops = 2 * Bp * Lp2 * D * Cp * 3 + 2 * Bp * Cp * OUTP
    bytes_accessed = (2 * Bp * Lp2 * D                 # bf16 activations (dominant term)
                      + 2 * (3 * D * Cp + Cp * OUTP)   # bf16 weights (fetched once)
                      + 4 * (Cp + OUTP)                # f32 biases
                      + 4 * Bp * OUTP)                 # f32 output

    kernel = functools.partial(rsn_encoder_kernel, seq_len=L, pool_rows=Lp)

    out = pl.pallas_call(
        kernel,
        out_shape=jax.ShapeDtypeStruct((Bp, OUTP), jnp.float32),
        grid_spec=pltpu.PrefetchScalarGridSpec(
            num_scalar_prefetch=0,
            grid=grid,
            in_specs=[
                pl.BlockSpec((Bt, Lp2, D), lambda i: (i, 0, 0)),   # activations: batch-tiled
                pl.BlockSpec((3, D, Cp), lambda i: (0, 0, 0)),     # weights: grid-invariant
                pl.BlockSpec((1, Cp), lambda i: (0, 0)),
                pl.BlockSpec((Cp, OUTP), lambda i: (0, 0)),
                pl.BlockSpec((1, OUTP), lambda i: (0, 0)),
            ],
            out_specs=pl.BlockSpec((Bt, OUTP), lambda i: (i, 0)),
        ),
        compiler_params=pltpu.CompilerParams(
            dimension_semantics=("parallel",),      # batch tiles are independent (v7x 2 TCs)
            vmem_limit_bytes=48 * 1024 * 1024,      # headroom under v7x's 64 MiB physical VMEM
        ),
        cost_estimate=pl.CostEstimate(
            flops=flops, transcendentals=0, bytes_accessed=bytes_accessed),
    )(x, wconv, bconv, wlin, blin)

    return out[:B, :OUT]


# ----------------------------- RSN forward -----------------------------

def rsn_forward(batch_input, params, perturbation=None):
    """Mirrors RSN.forward (eval mode).  Returns (word_emb, encoded)."""
    pos1 = batch_input[:, 0, :]
    pos2 = batch_input[:, 1, :]
    word = batch_input[:, 2, :]

    pos1_emb = jnp.take(params["pos1_table"], pos1, axis=0)     # (B, L, Dp)
    pos2_emb = jnp.take(params["pos2_table"], pos2, axis=0)     # (B, L, Dp)
    word_emb = jnp.take(params["word_table"], word, axis=0)     # (B, L, Dw)

    drop = word_emb  # TODO(synk): train-mode dropout not modeled (identity in eval mode)
    if perturbation is not None:
        drop = drop + perturbation

    cnn_input = jnp.concatenate([drop, pos1_emb, pos2_emb], axis=-1)  # (B, L, D)
    encoded = rsn_encode(cnn_input, params["conv_w"], params["conv_b"],
                         params["lin_w"], params["lin_b"])
    return word_emb, encoded


# ----------------------------- reference (pure JAX, f32) -----------------------------

def rsn_encode_ref(cnn_input, conv_w, conv_b, lin_w, lin_b):
    B, L, D = cnn_input.shape
    hi = jax.lax.Precision.HIGHEST
    x_pad = jnp.pad(cnn_input, ((0, 0), (1, 1), (0, 0)))
    conv = sum(jnp.einsum("bld,dc->blc", x_pad[:, k:k + L, :], conv_w[k], precision=hi)
               for k in range(3)) + conv_b
    conv = jnp.maximum(conv, 0.0)
    pooled = jnp.max(conv, axis=1)
    return jnp.dot(pooled, lin_w, precision=hi) + lin_b


# ----------------------------- main -----------------------------

if __name__ == "__main__":
    key = jax.random.PRNGKey(0)

    # Small synthetic shapes consistent with the module.
    B = 16           # batch (2 batch tiles of 8 -> real 2-step "parallel" grid)
    max_len = 16     # sequence length L
    vocab = 50       # word_vec_mat rows
    word_dim = 22    # word_vec_mat cols
    pos_dim = 5      # pos_emb_dim
    D = word_dim + 2 * pos_dim   # = 32, conv in-channels
    C = 128          # conv filters (original CNN uses 230)
    OUT = 64         # encoder output dim

    ks = jax.random.split(key, 8)
    params = {
        "word_table": jax.random.normal(ks[0], (vocab, word_dim), jnp.float32) * 0.1,
        "pos1_table": jax.random.normal(ks[1], (2 * max_len, pos_dim), jnp.float32) * 0.1,
        "pos2_table": jax.random.normal(ks[2], (2 * max_len, pos_dim), jnp.float32) * 0.1,
        "conv_w": jax.random.normal(ks[3], (3, D, C), jnp.float32) * 0.1,
        "conv_b": jax.random.normal(ks[4], (1, C), jnp.float32) * 0.01,
        "lin_w": jax.random.normal(ks[5], (C, OUT), jnp.float32) * 0.1,
        "lin_b": jax.random.normal(ks[6], (1, OUT), jnp.float32) * 0.01,
    }

    # batch_input: (B, 3, L) int32 -- rows: pos1, pos2, word indices
    pos_idx = jax.random.randint(ks[7], (B, 2, max_len), 0, 2 * max_len, jnp.int32)
    word_idx = jax.random.randint(jax.random.fold_in(key, 99),
                                  (B, 1, max_len), 0, vocab, jnp.int32)
    batch_input = jnp.concatenate([pos_idx, word_idx], axis=1)

    word_emb, encoded = jax.jit(lambda x: rsn_forward(x, params))(batch_input)
    jax.block_until_ready(encoded)

    # correctness check against a float32 reference (tolerance sized for bf16 MXU inputs)
    pos1_e = jnp.take(params["pos1_table"], batch_input[:, 0, :], axis=0)
    pos2_e = jnp.take(params["pos2_table"], batch_input[:, 1, :], axis=0)
    word_e = jnp.take(params["word_table"], batch_input[:, 2, :], axis=0)
    cnn_in = jnp.concatenate([word_e, pos1_e, pos2_e], axis=-1)
    ref = rsn_encode_ref(cnn_in, params["conv_w"], params["conv_b"],
                         params["lin_w"], params["lin_b"])

    assert word_emb.shape == (B, max_len, word_dim)
    assert encoded.shape == (B, OUT)
    max_diff = float(jnp.max(jnp.abs(encoded - ref)))
    assert jnp.allclose(encoded, ref, atol=3e-2, rtol=3e-2), (
        "mismatch vs reference, max abs diff = %r" % max_diff)

    print("KERNEL_OK")
</pallas_src>

<mosaic_0001>
module attributes {stable_mosaic.version = 11 : i64} {
  func.func @rsn_encoder_kernel(%arg0: i32, %arg1: memref<8x32x32xbf16, #tpu.memory_space<vmem>>, %arg2: memref<3x32x128xbf16, #tpu.memory_space<vmem>>, %arg3: memref<1x128xf32, #tpu.memory_space<vmem>>, %arg4: memref<128x128xbf16, #tpu.memory_space<vmem>>, %arg5: memref<1x128xf32, #tpu.memory_space<vmem>>, %arg6: memref<8x128xf32, #tpu.memory_space<vmem>>) attributes {dimension_semantics = [#tpu.dimension_semantics<parallel>], iteration_bounds = array<i64: 2>, scalar_prefetch = 0 : i64, scratch_operands = 0 : i64, tpu.core_type = #tpu.core_type<tc>, window_params = [{transform_indices = @transform_0, window_bounds = array<i64: 8, 32, 32>}, {pipeline_mode = #tpu.pipeline_mode<synchronous>, transform_indices = @transform_1, window_bounds = array<i64: 3, 32, 128>}, {pipeline_mode = #tpu.pipeline_mode<synchronous>, transform_indices = @transform_2, window_bounds = array<i64: 1, 128>}, {pipeline_mode = #tpu.pipeline_mode<synchronous>, transform_indices = @transform_3, window_bounds = array<i64: 128, 128>}, {pipeline_mode = #tpu.pipeline_mode<synchronous>, transform_indices = @transform_4, window_bounds = array<i64: 1, 128>}, {transform_indices = @transform_5, window_bounds = array<i64: 8, 128>}]} {
    %c0 = arith.constant 0 : index
    %c0_0 = arith.constant 0 : index
    %c0_1 = arith.constant 0 : index
    %0 = vector.load %arg1[%c0, %c0_0, %c0_1] : memref<8x32x32xbf16, #tpu.memory_space<vmem>>, vector<8x32x32xbf16>
    %1 = vector.shape_cast %0 : vector<8x32x32xbf16> to vector<256x32xbf16>
    %c0_2 = arith.constant 0 : index
    %c0_3 = arith.constant 0 : index
    %c0_4 = arith.constant 0 : index
    %2 = vector.load %arg2[%c0_2, %c0_3, %c0_4] : memref<3x32x128xbf16, #tpu.memory_space<vmem>>, vector<1x32x128xbf16>
    %3 = vector.shape_cast %2 : vector<1x32x128xbf16> to vector<32x128xbf16>
    %cst = arith.constant dense<0.000000e+00> : vector<256x128xf32>
    %4 = tpu.matmul %1, %3, %cst {dimension_numbers = #tpu.dot_dimension_numbers<[1], [0], [0], [1], [0, 0, 1, 1], [], []>} : vector<256x32xbf16>, vector<32x128xbf16>, vector<256x128xf32> -> vector<256x128xf32>
    %c1 = arith.constant 1 : index
    %c0_5 = arith.constant 0 : index
    %c0_6 = arith.constant 0 : index
    %5 = vector.load %arg2[%c1, %c0_5, %c0_6] : memref<3x32x128xbf16, #tpu.memory_space<vmem>>, vector<1x32x128xbf16>
    %6 = vector.shape_cast %5 : vector<1x32x128xbf16> to vector<32x128xbf16>
    %cst_7 = arith.constant dense<0.000000e+00> : vector<256x128xf32>
    %7 = tpu.matmul %1, %6, %cst_7 {dimension_numbers = #tpu.dot_dimension_numbers<[1], [0], [0], [1], [0, 0, 1, 1], [], []>} : vector<256x32xbf16>, vector<32x128xbf16>, vector<256x128xf32> -> vector<256x128xf32>
    %c2 = arith.constant 2 : index
    %c0_8 = arith.constant 0 : index
    %c0_9 = arith.constant 0 : index
    %8 = vector.load %arg2[%c2, %c0_8, %c0_9] : memref<3x32x128xbf16, #tpu.memory_space<vmem>>, vector<1x32x128xbf16>
    %9 = vector.shape_cast %8 : vector<1x32x128xbf16> to vector<32x128xbf16>
    %cst_10 = arith.constant dense<0.000000e+00> : vector<256x128xf32>
    %10 = tpu.matmul %1, %9, %cst_10 {dimension_numbers = #tpu.dot_dimension_numbers<[1], [0], [0], [1], [0, 0, 1, 1], [], []>} : vector<256x32xbf16>, vector<32x128xbf16>, vector<256x128xf32> -> vector<256x128xf32>
    %c0_11 = arith.constant 0 : index
    %c0_12 = arith.constant 0 : index
    %11 = vector.load %arg3[%c0_11, %c0_12] : memref<1x128xf32, #tpu.memory_space<vmem>>, vector<1x128xf32>
    %12 = vector.broadcast %11 : vector<1x128xf32> to vector<256x128xf32>
    %13 = arith.addf %7, %12 : vector<256x128xf32>
    %14 = vector.shape_cast %4 : vector<256x128xf32> to vector<8x32x128xf32>
    %15 = vector.shape_cast %13 : vector<256x128xf32> to vector<8x32x128xf32>
    %16 = vector.shape_cast %10 : vector<256x128xf32> to vector<8x32x128xf32>
    %17 = vector.extract_strided_slice %14 {offsets = [0, 0, 0], sizes = [8, 16, 128], strides = [1, 1, 1]} : vector<8x32x128xf32> to vector<8x16x128xf32>
    %18 = vector.extract_strided_slice %15 {offsets = [0, 1, 0], sizes = [8, 16, 128], strides = [1, 1, 1]} : vector<8x32x128xf32> to vector<8x16x128xf32>
    %19 = arith.addf %17, %18 : vector<8x16x128xf32>
    %20 = vector.extract_strided_slice %16 {offsets = [0, 2, 0], sizes = [8, 16, 128], strides = [1, 1, 1]} : vector<8x32x128xf32> to vector<8x16x128xf32>
    %21 = arith.addf %19, %20 : vector<8x16x128xf32>
    %cst_13 = arith.constant 0.000000e+00 : f32
    %22 = vector.broadcast %cst_13 : f32 to vector<8x16x128xf32>
    %23 = arith.maximumf %21, %22 : vector<8x16x128xf32>
    %cst_14 = arith.constant dense<0xFF800000> : vector<8x128xf32>
    %24 = vector.multi_reduction <maximumf>, %23, %cst_14 [1] : vector<8x16x128xf32> to vector<8x128xf32>
    %25 = arith.truncf %24 : vector<8x128xf32> to vector<8x128xbf16>
    %c0_15 = arith.constant 0 : index
    %c0_16 = arith.constant 0 : index
    %26 = vector.load %arg4[%c0_15, %c0_16] : memref<128x128xbf16, #tpu.memory_space<vmem>>, vector<128x128xbf16>
    %cst_17 = arith.constant dense<0.000000e+00> : vector<8x128xf32>
    %27 = tpu.matmul %25, %26, %cst_17 {dimension_numbers = #tpu.dot_dimension_numbers<[1], [0], [0], [1], [0, 0, 1, 1], [], []>} : vector<8x128xbf16>, vector<128x128xbf16>, vector<8x128xf32> -> vector<8x128xf32>
    %c0_18 = arith.constant 0 : index
    %c0_19 = arith.constant 0 : index
    %28 = vector.load %arg5[%c0_18, %c0_19] : memref<1x128xf32, #tpu.memory_space<vmem>>, vector<1x128xf32>
    %29 = vector.broadcast %28 : vector<1x128xf32> to vector<8x128xf32>
    %30 = arith.addf %27, %29 : vector<8x128xf32>
    %c0_20 = arith.constant 0 : index
    %c0_21 = arith.constant 0 : index
    %31 = vector.load %arg6[%c0_20, %c0_21] : memref<8x128xf32, #tpu.memory_space<vmem>>, vector<8x128xf32>
    tpu.vector_store %arg6[%c0_20, %c0_21], %30 {strides = array<i32>} : memref<8x128xf32, #tpu.memory_space<vmem>>, vector<8x128xf32>,
    return
  }
  func.func @transform_0(%arg0: i32) -> (i32, i32, i32) {
    %c0_i32 = arith.constant 0 : i32
    %c0_i32_0 = arith.constant 0 : i32
    %c0_i32_1 = arith.constant 0 : i32
    return %arg0, %c0_i32, %c0_i32_0 : i32, i32, i32
  }
  func.func @transform_1(%arg0: i32) -> (i32, i32, i32) {
    %c0_i32 = arith.constant 0 : i32
    %c0_i32_0 = arith.constant 0 : i32
    %c0_i32_1 = arith.constant 0 : i32
    %c0_i32_2 = arith.constant 0 : i32
    return %c0_i32, %c0_i32_0, %c0_i32_1 : i32, i32, i32
  }
  func.func @transform_2(%arg0: i32) -> (i32, i32) {
    %c0_i32 = arith.constant 0 : i32
    %c0_i32_0 = arith.constant 0 : i32
    %c0_i32_1 = arith.constant 0 : i32
    return %c0_i32, %c0_i32_0 : i32, i32
  }
  func.func @transform_3(%arg0: i32) -> (i32, i32) {
    %c0_i32 = arith.constant 0 : i32
    %c0_i32_0 = arith.constant 0 : i32
    %c0_i32_1 = arith.constant 0 : i32
    return %c0_i32, %c0_i32_0 : i32, i32
  }
  func.func @transform_4(%arg0: i32) -> (i32, i32) {
    %c0_i32 = arith.constant 0 : i32
    %c0_i32_0 = arith.constant 0 : i32
    %c0_i32_1 = arith.constant 0 : i32
    return %c0_i32, %c0_i32_0 : i32, i32
  }
  func.func @transform_5(%arg0: i32) -> (i32, i32) {
    %c0_i32 = arith.constant 0 : i32
    %c0_i32_0 = arith.constant 0 : i32
    return %arg0, %c0_i32 : i32, i32
  }
}

</mosaic_0001>

<bundles_post_ra>
// kernel: _lambda_.1
= control target key start
LH: loop header
LB: loop body
LE: loop exit
PB: predicated region body
PF: predicated region fallthrough
CT: control target
= control target key end

     0   :  { %10 = vsyncpa [#allocation3], 0  ;;  %s2193_s0 = inlined_call_operand.vmem [shape: bf16[16,32,32], index: 0, kind: input, shape index: {}]   ;;  %s2194_s1 = inlined_call_operand.vmem [shape: bf16[3,32,128], index: 1, kind: input, shape index: {}]   ;;  %s2195_s2 = inlined_call_operand.vmem [shape: f32[1,128], index: 2, kind: input, shape index: {}]   ;;  %s2196_s3 = inlined_call_operand.vmem [shape: bf16[128,128], index: 3, kind: input, shape index: {}]   ;;  %s2197_s4 = inlined_call_operand.vmem [shape: f32[1,128], index: 4, kind: input, shape index: {}]   ;;  %s2198_s5 = inlined_call_operand.hbm [shape: f32[16,128], index: 5, kind: output, shape index: {}]  }
   0x1   :  { %12 = vsyncpa [#allocation3 + $0x1], 0  ;;  %s1853_s18 = smov 0   ;;  %s1855_s19 = smov 0  }
   0x2   :  { %s1857_s20 = smov 0   ;;  %s1859_s21 = smov 0  }
   0x3 LB: > { %s1874_s22 = sadd.s32 4294967295, %s1818_s21   ;;  %s1389_s23 = sadd.s32 4294967294, %s1818_s21   ;;  %s1818_s21 = sphi %s1859_s21, %s2204_s21   ;;  %s1814_s20 = sphi %s1857_s20, %s2203_s20   ;;  %s1810_s19 = sphi %s1855_s19, %s2202_s19   ;;  %s1806_s18 = sphi %s1853_s18, %s2201_s18  }
   0x4   : > { %s1878_s24 = sadd.s32 1, %s1818_s21   ;;  %s135_s25 = sadd.s32 1, %s1814_s20 }
   0x5   : > { %s132_s26 = ssub.s32 %s1818_s21, %s1878_s24  ;;  %p145_p0 = scmp.ne.s32.totalorder %s1814_s20, %s1810_s19 }
   0x6   : > { %p133_p1 = scmp.eq.s32.totalorder %s132_s26, 0  ;;  %p146_p2 = scmp.eq.s32.totalorder %s1874_s22, 1 }
   0x7   : > { %p151_p3 = scmp.ne.s32.totalorder %s1810_s19, %s1806_s18  ;;  %p152_p4 = scmp.eq.s32.totalorder %s1389_s23, 1 }
   0x8   : > { %s1889_s27 = scalar_select %p133_p1, %s1814_s20, %s135_s25  }
   0x9   : > { %p1891_p5 = por %p146_p2, %p145_p0  ;;  %p1895_p6 = por %p152_p4, %p151_p3 }
   0xa   : > { %p1392_p7 = scmp.ge.s32.totalorder %s1818_s21, 1  ;;  %p192_p8 = scmp.lt.s32.totalorder %s1818_s21, 3 }
   0xc   : > { %p193_p9 = pnand %p1392_p7, %p192_p8 }
   0xd   : > { %v1726_v0 = vld [vmem:[%s2194_s1] sm:$0xff] (!%p193_p9)   ;;  %s1394_s7 = sshll.u32 (!%p193_p9), %s1874_s22, 3  ;;  %v1727_v1 = vld [vmem:[%s2194_s1 + $0x8] sm:$0xff] (!%p193_p9)   ;;  %v1730_v2 = vld [vmem:[%s2194_s1 + $0x10] sm:$0xff] (!%p193_p9)   ;;  %vm357_vm0 = vcmask (!%p193_p9), 261120   ;;  %v1820_v22 = vmov (!%p193_p9), 0.0  }
   0xe   : > { %196 = sbr.rel (%p193_p9) target bundleno = 597 (0x255), region = 40  ;;  %p222_p10 = scmp.lt.s32.totalorder (!%p193_p9), %s1394_s7, 15  ;;  %1553 = vmatprep.subr.bf16.mxu0 (!%p193_p9), %v1726_v0  ;;  %1681 = vmatprep.subr.bf16.mxu1 (!%p193_p9), %v1726_v0  ;;  %v1737_v3 = vld [vmem:[%s2194_s1 + $0x20] sm:$0xff] (!%p193_p9)   ;;  %v1738_v4 = vld [vmem:[%s2194_s1 + $0x18] sm:$0xff] (!%p193_p9)   ;;  %v1745_v9 = vld [vmem:[%s2194_s1 + $0x28] sm:$0xff] (!%p193_p9)   ;;  %vm1821_vm1 = vmmov (!%p193_p9), 0  }
   0xf   : > { %1554 = vmatpush3.bf16.msra.mxu0 (!%p193_p9), %v1726_v0  ;;  %1683 = vmatpush3.bf16.msra.mxu1 (!%p193_p9), %v1726_v0  ;;  %v1748_v23 = vld [vmem:[%s2196_s3] sm:$0xff] (!%p193_p9)   ;;  %v1749_v24 = vld [vmem:[%s2196_s3 + $0x8] sm:$0xff] (!%p193_p9)   ;;  %v1750_v25 = vld [vmem:[%s2196_s3 + $0x10] sm:$0xff] (!%p193_p9)   ;;  %vm1019_vm2 = vcmask (!%p193_p9), 1045504   ;;  %vm922_vm3 = vcmask (!%p193_p9), 1046528   ;;  %vm1211_vm4 = vcmask (!%p193_p9), 1041409  }
  0x10   : > { %1555 = vmatprep.subr.bf16.mxu0 (!%p193_p9), %v1727_v1  ;;  %1682 = vmatprep.subr.bf16.mxu1 (!%p193_p9), %v1727_v1  ;;  %v1751_v26 = vld [vmem:[%s2196_s3 + $0x18] sm:$0xff] (!%p193_p9)   ;;  %v1752_v27 = vld [vmem:[%s2196_s3 + $0x20] sm:$0xff] (!%p193_p9)   ;;  %v1753_v28 = vld [vmem:[%s2196_s3 + $0x28] sm:$0xff] (!%p193_p9)   ;;  %vm1213_vm5 = vcmask (!%p193_p9), 1042434   ;;  %vm1215_vm6 = vcmask (!%p193_p9), 1043459   ;;  %vm1217_vm7 = vcmask (!%p193_p9), 1044484  }
  0x11   : > { %v1754_v29 = vld [vmem:[%s2196_s3 + $0x30] sm:$0xff] (!%p193_p9)   ;;  %v1755_v30 = vld [vmem:[%s2196_s3 + $0x38] sm:$0xff] (!%p193_p9)   ;;  %vm1219_vm8 = vcmask (!%p193_p9), 1045509   ;;  %vm1221_vm9 = vcmask (!%p193_p9), 1046534   ;;  %vm1223_vm10 = vcmask (!%p193_p9), 1047559   ;;  %s218_s8 = sand.u32 (!%p193_p9), 1, %s1810_s19  }
  0x12   : > { %s1393_s9 = sshll.u32 (!%p193_p9), %s218_s8, 3  ;;  %s1486_s12 = sshll.u32 (!%p193_p9), %s1874_s22, 7 }
  0x13   : > { %1556 = vmatpush3.bf16.msra.mxu0 (!%p193_p9), %v1727_v1  ;;  %1684 = vmatpush3.bf16.msra.mxu1 (!%p193_p9), %v1727_v1  ;;  %s220_s13 = scalar_lea.vmem (!%p193_p9), [#allocation2], %s1393_s9  ;;  %s1317_s23 = scalar_lea.sflag (!%p193_p9), [#allocation3], %s218_s8 }
  0x14   : > { %1625 = vmatprep.subr.bf16.mxu0 (!%p193_p9), %v1730_v2  ;;  %1589 = vmatprep.subr.bf16.mxu1 (!%p193_p9), %v1737_v3  ;;  %s1822_s25 = smov (!%p193_p9), [#allocation2]  }
  0x15   : > { %s2206_s7 = smov (!%p222_p10, %s1394_s7), 15  ;;  %s1760_s26 = sshll.u32 %s1822_s25, 4  ;;  %s1761_s26 = int_to_ptr.vmem [resolvable:$false] %s1760_s26 }
  0x16   : > { %s1489_s14 = sshll.u32 %s2206_s7, 4  ;;  %s1762_s30 = scalar_lea.vmem %s1761_s26, 256 }
  0x17   : > { %s1917_s17 = scalar_lea.vmem %s2193_s0, %s1489_s14  ;;  %s1330_s14 = sshll.u32 %s220_s13, 4  ;;  %s2153_s14 = int_to_ptr.vmem [resolvable:$true] %s1330_s14 }
  0x18   : > { %v1728_v5 = vld [vmem:[%s1917_s17] sm:$0xff]   ;;  %v1729_v6 = vld [vmem:[%s1917_s17 + $0x8] sm:$0xff]   ;;  %v1731_v7 = vld [vmem:[%s1917_s17 + $0x10] sm:$0xff]   ;;  %s1756_s22 = scalar_lea.vmem %s2153_s14, 128  ;;  %p1763_p0 = scmp.lt.s32.totalorder %s2153_s14, %s1761_s26 }
  0x19   : > { %1557 = vmatprep.mubr.msk.bf16.mxu0 %vm357_vm0, %v1728_v5  ;;  %v1732_v8 = vld [vmem:[%s1917_s17 + $0x18] sm:$0xff]   ;;  %v1735_v10 = vld [vmem:[%s1917_s17 + $0x50] sm:$0xff]   ;;  %v1733_v12 = vld [vmem:[%s1917_s17 + $0x20] sm:$0xff]   ;;  %p1757_p11 = scmp.ne.s32.totalorder %s2153_s14, %s1756_s22  ;;  %p1764_p1 = scmp.lt.s32.totalorder %s1762_s30, %s1756_s22 }
  0x1a   : > { %1558 = vmatmul.mubr.msk.bf16.vlgmr.msra.gmra.mrb[0].mxu0 %vm357_vm0, %v1729_v6  ;;  %v1736_v11 = vld [vmem:[%s1917_s17 + $0x58] sm:$0xff]   ;;  %1577 = vmatprep.mubr.msk.bf16.mxu1 %vm357_vm0, %v1735_v10  ;;  %v1741_v13 = vld [vmem:[%s1917_s17 + $0x60] sm:$0xff]   ;;  %v1734_v14 = vld [vmem:[%s1917_s17 + $0x28] sm:$0xff]  }
  0x1b   : > { %1626 = vmatpush3.bf16.msra.mxu0 %v1730_v2  ;;  %1561 = vmatprep.mubr.msk.bf16.mxu0 %vm357_vm0, %v1731_v7  ;;  %v1742_v15 = vld [vmem:[%s1917_s17 + $0x68] sm:$0xff]   ;;  %v1746_v16 = vld [vmem:[%s1917_s17 + $0x70] sm:$0xff]   ;;  %v1747_v18 = vld [vmem:[%s1917_s17 + $0x78] sm:$0xff]   ;;  %p1758_p12 = pnand %p1757_p11, %p1891_p5  ;;  %p1765_p2 = por %p1764_p1, %p1763_p0 }
  0x1c   : > { %1627 = vmatprep.subr.bf16.mxu0 %v1738_v4  ;;  %1578 = vmatmul.mubr.msk.bf16.vlgmr.msra.gmra.mrb[0].mxu1 %vm357_vm0, %v1736_v11  ;;  %v1739_v17 = vld [vmem:[%s1917_s17 + $0x30] sm:$0xff]   ;;  %v1740_v19 = vld [vmem:[%s1917_s17 + $0x38] sm:$0xff]   ;;  %v1743_v20 = vld [vmem:[%s1917_s17 + $0x40] sm:$0xff]  }
  0x1d   : > { %1590 = vmatpush3.bf16.msra.mxu1 %v1737_v3  ;;  %1581 = vmatprep.mubr.msk.bf16.mxu1 %vm357_vm0, %v1741_v13  ;;  %v1744_v21 = vld [vmem:[%s1917_s17 + $0x48] sm:$0xff]   ;;  %s2151_s17 = scalar_lea.hbm %s2198_s5, %s1486_s12  ;;  %p1759_p13 = pneg %p1758_p12 }
  0x1e   : > { %1591 = vmatprep.subr.bf16.mxu1 %v1745_v9 }
  0x1f   : > { %1628 = vmatpush3.bf16.msra.mxu0 %v1738_v4  ;;  %p1766_p3 = pnand %p1765_p2, %p1759_p13 }
  0x21   : > { %1592 = vmatpush3.bf16.msra.mxu1 %v1745_v9  ;;  %v2050_v9 = vld [vmem:[%s2195_s2] ss:$0 sm:$0xff] }
  0x22   : > { %1562 = vmatmul.mubr.msk.bf16.gmra.mrb[4].mxu0 %vm357_vm0, %v1732_v8  ;;  %1661 = vmatprep.subr.bf16.mxu1 %v1820_v22 }
  0x23   : > { %1565 = vmatprep.mubr.msk.bf16.mxu0 %vm357_vm0, %v1733_v12 }
  0x24   : > { %1582 = vmatmul.mubr.msk.bf16.gmra.mrb[4].mxu1 %vm357_vm0, %v1742_v15 }
  0x25   : > { %1585 = vmatprep.mubr.msk.bf16.mxu1 %vm357_vm0, %v1746_v16 }
  0x2a   : > { %1566 = vmatmul.mubr.msk.bf16.gmra.mrb[8].mxu0 %vm357_vm0, %v1734_v14 }
  0x2b   : > { %1569 = vmatprep.mubr.msk.bf16.mxu0 %vm357_vm0, %v1739_v17 }
  0x2c   : > { %1586 = vmatmul.mubr.msk.bf16.gmra.mrb[8].mxu1 %vm357_vm0, %v1747_v18 }
  0x2d   : > { %1593 = vmatprep.mubr.msk.bf16.mxu1 %vm357_vm0, %v1728_v5 }
  0x32   : > { %1570 = vmatmul.mubr.msk.bf16.gmra.mrb[12].mxu0 %vm357_vm0, %v1740_v19 }
  0x33   : > { %1573 = vmatprep.mubr.msk.bf16.mxu0 %vm357_vm0, %v1743_v20 }
  0x34   : > { %1594 = vmatmul.mubr.msk.bf16.vlgmr.msra.gmra.mrb[12].mxu1 %vm357_vm0, %v1729_v6 }
  0x35   : > { %1597 = vmatprep.mubr.msk.bf16.mxu1 %vm357_vm0, %v1731_v7  ;;  %1662 = vmatpush3.bf16.msra.mxu1 %v1748_v23 }
  0x36   : > { %1663 = vmatprep.subr.bf16.mxu1 %v1820_v22 }
  0x39   : > { %1664 = vmatpush3.bf16.msra.mxu1 %v1749_v24 }
  0x3a   : > { %1574 = vmatmul.mubr.msk.bf16.gmra.mrb[16].mxu0 %vm357_vm0, %v1744_v21  ;;  %1665 = vmatprep.subr.bf16.mxu1 %v1820_v22 }
  0x3b   : > { %1629 = vmatprep.mubr.msk.bf16.mxu0 %vm357_vm0, %v1728_v5 }
  0x3c   : > { %1598 = vmatmul.mubr.msk.bf16.gmra.mrb[16].mxu1 %vm357_vm0, %v1732_v8 }
  0x3d   : > { %1601 = vmatprep.mubr.msk.bf16.mxu1 %vm357_vm0, %v1733_v12  ;;  %1666 = vmatpush3.bf16.msra.mxu1 %v1750_v25 }
  0x3e   : > { %1667 = vmatprep.subr.bf16.mxu1 %v1820_v22 }
  0x41   : > { %1668 = vmatpush3.bf16.msra.mxu1 %v1751_v26 }
  0x42   : > { %1630 = vmatmul.mubr.msk.bf16.vlgmr.msra.gmra.mrb[20].mxu0 %vm357_vm0, %v1729_v6  ;;  %1669 = vmatprep.subr.bf16.mxu1 %v1820_v22 }
  0x43   : > { %1633 = vmatprep.mubr.msk.bf16.mxu0 %vm357_vm0, %v1731_v7 }
  0x44   : > { %1602 = vmatmul.mubr.msk.bf16.gmra.mrb[20].mxu1 %vm357_vm0, %v1734_v14 }
  0x45   : > { %1605 = vmatprep.mubr.msk.bf16.mxu1 %vm357_vm0, %v1739_v17  ;;  %1670 = vmatpush3.bf16.msra.mxu1 %v1752_v27 }
  0x46   : > { %1671 = vmatprep.subr.bf16.mxu1 %v1820_v22 }
  0x49   : > { %1672 = vmatpush3.bf16.msra.mxu1 %v1753_v28 }
  0x4a   : > { %1634 = vmatmul.mubr.msk.bf16.gmra.mrb[24].mxu0 %vm357_vm0, %v1732_v8  ;;  %1673 = vmatprep.subr.bf16.mxu1 %v1820_v22 }
  0x4b   : > { %1637 = vmatprep.mubr.msk.bf16.mxu0 %vm357_vm0, %v1733_v12 }
  0x4c   : > { %1606 = vmatmul.mubr.msk.bf16.gmra.mrb[24].mxu1 %vm357_vm0, %v1740_v19 }
  0x4d   : > { %1609 = vmatprep.mubr.msk.bf16.mxu1 %vm357_vm0, %v1743_v20  ;;  %1674 = vmatpush3.bf16.msra.mxu1 %v1754_v29 }
  0x4e   : > { %1675 = vmatprep.subr.bf16.mxu1 %v1820_v22 }
  0x51   : > { %1676 = vmatpush3.bf16.msra.mxu1 %v1755_v30 }
  0x52   : > { %1638 = vmatmul.mubr.msk.bf16.gmra.mrb[28].mxu0 %vm357_vm0, %v1734_v14 }
  0x53   : > { %1641 = vmatprep.mubr.msk.bf16.mxu0 %vm357_vm0, %v1739_v17 }
  0x54   : > { %1610 = vmatmul.mubr.msk.bf16.gmra.mrb[28].mxu1 %vm357_vm0, %v1744_v21 }
  0x55   : > { %1613 = vmatprep.mubr.msk.bf16.mxu1 %vm357_vm0, %v1735_v10 }
  0x5a   : > { %1642 = vmatmul.mubr.msk.bf16.gmra.mrb[32].mxu0 %vm357_vm0, %v1740_v19 }
  0x5b   : > { %1645 = vmatprep.mubr.msk.bf16.mxu0 %vm357_vm0, %v1743_v20 }
  0x5c   : > { %1614 = vmatmul.mubr.msk.bf16.gmra.mrb[32].mxu1 %vm357_vm0, %v1736_v11 }
  0x5d   : > { %1617 = vmatprep.mubr.msk.bf16.mxu1 %vm357_vm0, %v1741_v13 }
  0x62   : > { %1646 = vmatmul.mubr.msk.bf16.gmra.mrb[36].mxu0 %vm357_vm0, %v1744_v21 }
  0x63   : > { %1649 = vmatprep.mubr.msk.bf16.mxu0 %vm357_vm0, %v1735_v10 }
  0x64   : > { %1618 = vmatmul.mubr.msk.bf16.gmra.mrb[36].mxu1 %vm357_vm0, %v1742_v15 }
  0x65   : > { %1621 = vmatprep.mubr.msk.bf16.mxu1 %vm357_vm0, %v1746_v16 }
  0x6a   : > { %1650 = vmatmul.mubr.msk.bf16.gmra.mrb[40].mxu0 %vm357_vm0, %v1736_v11 }
  0x6b   : > { %1653 = vmatprep.mubr.msk.bf16.mxu0 %vm357_vm0, %v1741_v13 }
  0x6c   : > { %1622 = vmatmul.mubr.msk.bf16.gmra.mrb[40].mxu1 %vm357_vm0, %v1747_v18 }
  0x6d   : > { %1677 = vmatprep.mubr.msk.bf16.mxu1 %vm1821_vm1, %v1820_v22 }
  0x72   : > { %1654 = vmatmul.mubr.msk.bf16.gmra.mrb[44].mxu0 %vm357_vm0, %v1742_v15 }
  0x73   : > { %1657 = vmatprep.mubr.msk.bf16.mxu0 %vm357_vm0, %v1746_v16 }
  0x7a   : > { %1658 = vmatmul.mubr.msk.bf16.gmra.mrb[48].mxu0 %vm357_vm0, %v1747_v18 }
  0xed   : > { %v1559_v31 = vpop.f32.mrb[0].mxu0 }
  0xee   : > { %v2013_v32 = vpop.f32.mrb[1].mxu0 }
  0xef   : > { %v1560_v33 = vpop.f32.mrb[2].mxu0  ;;  %v1579_v35 = vpop.f32.mrb[0].mxu1 }
  0xf0   : > { %v2015_v34 = vpop.f32.mrb[3].mxu0  ;;  %v2017_v36 = vpop.f32.mrb[1].mxu1 }
  0xf1   : > { %v1580_v38 = vpop.f32.mrb[2].mxu1 }
  0xf2   : > { %v2021_v40 = vpop.f32.mrb[3].mxu1 }
  0xf5   : > { %v1563_v37 = vpop.f32.mrb[4].mxu0 }
  0xf6   : > { %v2019_v39 = vpop.f32.mrb[5].mxu0 }
  0xf7   : > { %v1564_v41 = vpop.f32.mrb[6].mxu0  ;;  %v1583_v43 = vpop.f32.mrb[4].mxu1 }
  0xf8   : > { %v2023_v42 = vpop.f32.mrb[7].mxu0  ;;  %v2025_v44 = vpop.f32.mrb[5].mxu1 }
  0xf9   : > { %v1584_v46 = vpop.f32.mrb[6].mxu1 }
  0xfa   : > { %v2029_v48 = vpop.f32.mrb[7].mxu1 }
  0xfd   : > { %v1567_v45 = vpop.f32.mrb[8].mxu0 }
  0xfe   : > { %v2027_v47 = vpop.f32.mrb[9].mxu0 }
  0xff   : > { %v1568_v49 = vpop.f32.mrb[10].mxu0  ;;  %v1587_v51 = vpop.f32.mrb[8].mxu1 }
 0x100   : > { %v2031_v50 = vpop.f32.mrb[11].mxu0  ;;  %v2033_v52 = vpop.f32.mrb[9].mxu1 }
 0x101   : > { %v1588_v54 = vpop.f32.mrb[10].mxu1 }
 0x102   : > { %v2037_v56 = vpop.f32.mrb[11].mxu1 }
 0x105   : > { %v1571_v53 = vpop.f32.mrb[12].mxu0 }
 0x106   : > { %v2035_v55 = vpop.f32.mrb[13].mxu0 }
 0x107   : > { %v1572_v57 = vpop.f32.mrb[14].mxu0  ;;  %v1595_v59 = vpop.f32.mrb[12].mxu1 }
 0x108   : > { %v2039_v58 = vpop.f32.mrb[15].mxu0  ;;  %v607_v60 = vpop.f32.mrb[13].mxu1  ;;  %v1023_v62 = vrot.slane %v1595_v59, 2 }
 0x109   : > { %v1020_v63 = vrot.slane %v607_v60, 2  ;;  %v1596_v0 = vpop.f32.mrb[14].mxu1 }
 0x10a   : > { %v610_v2 = vpop.f32.mrb[15].mxu1 }
 0x10b   : > { %v1021_v4 = vrot.slane %v610_v2, 2 }
 0x10d   : > { %v1575_v61 = vpop.f32.mrb[16].mxu0  ;;  %v1022_v6 = vsel %vm1019_vm2, %v1020_v63, %v1021_v4  ;;  %v1024_v7 = vsel %vm1019_vm2, %v1021_v4, %v1023_v62 }
 0x10e   : > { %v2041_v1 = vpop.f32.mrb[17].mxu0 }
 0x10f   : > { %v1576_v3 = vpop.f32.mrb[18].mxu0  ;;  %v1599_v8 = vpop.f32.mrb[16].mxu1 }
 0x110   : > { %v2043_v5 = vpop.f32.mrb[19].mxu0  ;;  %v622_v10 = vpop.f32.mrb[17].mxu1  ;;  %v1028_v12 = vrot.slane %v1599_v8, 2 }
 0x111   : > { %v1025_v13 = vrot.slane %v622_v10, 2  ;;  %v1600_v14 = vpop.f32.mrb[18].mxu1 }
 0x112   : > { %v625_v16 = vpop.f32.mrb[19].mxu1 }
 0x113   : > { %v1026_v20 = vrot.slane %v625_v16, 2 }
 0x115   : > { %v1631_v11 = vpop.f32.mrb[20].mxu0  ;;  %v1027_v23 = vsel %vm1019_vm2, %v1025_v13, %v1026_v20  ;;  %v1029_v24 = vsel %vm1019_vm2, %v1026_v20, %v1028_v12 }
 0x116   : > { %v779_v15 = vpop.f32.mrb[21].mxu0  ;;  %v788_v17 = vadd.f32 %v1631_v11, %v2050_v9 }
 0x117   : > { %v780_v18 = vadd.f32 %v2050_v9, %v779_v15  ;;  %v1632_v19 = vpop.f32.mrb[22].mxu0  ;;  %v1603_v28 = vpop.f32.mrb[20].mxu1 }
 0x118   : > { %v782_v21 = vpop.f32.mrb[23].mxu0  ;;  %v926_v25 = vrot.slane %v788_v17, 1  ;;  %v637_v29 = vpop.f32.mrb[21].mxu1  ;;  %v1033_v35 = vrot.slane %v1603_v28, 2 }
 0x119   : > { %v783_v22 = vadd.f32 %v2050_v9, %v782_v21  ;;  %v923_v26 = vrot.slane %v780_v18, 1  ;;  %v1030_v37 = vrot.slane %v637_v29, 2  ;;  %v1604_v38 = vpop.f32.mrb[22].mxu1 }
 0x11a   : > { %v640_v46 = vpop.f32.mrb[23].mxu1 }
 0x11b   : > { %v924_v27 = vrot.slane %v783_v22, 1  ;;  %v1031_v54 = vrot.slane %v640_v46, 2 }
 0x11d   : > { %v925_v30 = vsel %vm922_vm3, %v923_v26, %v924_v27  ;;  %v927_v31 = vsel %vm922_vm3, %v924_v27, %v926_v25  ;;  %v1635_v33 = vpop.f32.mrb[24].mxu0  ;;  %v1032_v62 = vsel %vm1019_vm2, %v1030_v37, %v1031_v54  ;;  %v1034_v63 = vsel %vm1019_vm2, %v1031_v54, %v1033_v35 }
 0x11e   : > { %v979_v41 = vadd.f32 %v925_v30, %v2013_v32  ;;  %v980_v43 = vadd.f32 %v927_v31, %v2015_v34  ;;  %v794_v45 = vpop.f32.mrb[25].mxu0  ;;  %v803_v49 = vadd.f32 %v1635_v33, %v2050_v9 }
 0x11f   : > { %v795_v51 = vadd.f32 %v2050_v9, %v794_v45  ;;  %v1636_v53 = vpop.f32.mrb[26].mxu0  ;;  %v1607_v4 = vpop.f32.mrb[24].mxu1 }
 0x120   : > { %v1076_v57 = vadd.f32 %v1022_v6, %v979_v41  ;;  %v1077_v59 = vadd.f32 %v1024_v7, %v980_v43  ;;  %v797_v60 = vpop.f32.mrb[27].mxu0  ;;  %v931_v34 = vrot.slane %v803_v49, 1  ;;  %v652_v10 = vpop.f32.mrb[25].mxu1  ;;  %v1038_v12 = vrot.slane %v1607_v4, 2 }
 0x121   : > { %v798_v61 = vadd.f32 %v2050_v9, %v797_v60  ;;  %v928_v2 = vrot.slane %v795_v51, 1  ;;  %v1035_v13 = vrot.slane %v652_v10, 2  ;;  %v1608_v14 = vpop.f32.mrb[26].mxu1 }
 0x122   : > { %v1092_v32 = vmax.f32 %v1076_v57, 0.0  ;;  %v1093_v0 = vmax.f32 %v1077_v59, 0.0  ;;  %v655_v19 = vpop.f32.mrb[27].mxu1 }
 0x123   : > { %v929_v3 = vrot.slane %v798_v61, 1  ;;  %v1036_v25 = vrot.slane %v655_v19, 2 }
 0x124   : > { %v1108_v8 = vmax.f32 %v1092_v32, %v1093_v0 }
 0x125   : > { %v930_v11 = vsel %vm922_vm3, %v928_v2, %v929_v3  ;;  %v932_v6 = vsel %vm922_vm3, %v929_v3, %v931_v34  ;;  %v1639_v7 = vpop.f32.mrb[28].mxu0  ;;  %v2074_v31 = vsel %vm1019_vm2, %v1035_v13, %v1036_v25 }
 0x126   : > { %v1109_v15 = vrot.slane %v1108_v8, 4  ;;  %v981_v16 = vadd.f32 %v930_v11, %v2019_v39  ;;  %v982_v17 = vadd.f32 %v932_v6, %v2023_v42  ;;  %v809_v18 = vpop.f32.mrb[29].mxu0  ;;  %v818_v20 = vadd.f32 %v1639_v7, %v2050_v9 }
 0x127   : > { %v810_v21 = vadd.f32 %v2050_v9, %v809_v18  ;;  %v1640_v22 = vpop.f32.mrb[30].mxu0  ;;  %v2077_v39 = vsel %vm1019_vm2, %v1036_v25, %v1038_v12  ;;  %v1611_v43 = vpop.f32.mrb[28].mxu1 }
 0x128   : > { %v1110_v26 = vmax.f32 %v1108_v8, %v1109_v15  ;;  %v1078_v27 = vadd.f32 %v1027_v23, %v981_v16  ;;  %v1079_v28 = vadd.f32 %v1029_v24, %v982_v17  ;;  %v812_v29 = vpop.f32.mrb[31].mxu0  ;;  %v936_v37 = vrot.slane %v818_v20, 1  ;;  %v667_v23 = vpop.f32.mrb[29].mxu1 }
 0x129   : > { %v813_v30 = vadd.f32 %v2050_v9, %v812_v29  ;;  %v933_v38 = vrot.slane %v810_v21, 1  ;;  %v1040_v53 = vrot.slane %v667_v23, 2  ;;  %v1612_v54 = vpop.f32.mrb[30].mxu1  ;;  %v1043_v4 = vrot.slane %v1611_v43, 2 }
 0x12a   : > { %v1111_v42 = vrot.slane %v1110_v26, 2  ;;  %v1094_v33 = vmax.f32 %v1078_v27, 0.0  ;;  %v1095_v35 = vmax.f32 %v1079_v28, 0.0  ;;  %v670_v0 = vpop.f32.mrb[31].mxu1 }
 0x12b   : > { %v934_v41 = vrot.slane %v813_v30, 1  ;;  %v1041_v8 = vrot.slane %v670_v0, 2 }
 0x12c   : > { %v1112_v45 = vmax.f32 %v1110_v26, %v1111_v42  ;;  %v1115_v46 = vmax.f32 %v1094_v33, %v1095_v35 }
 0x12d   : > { %v935_v24 = vsel %vm922_vm3, %v933_v38, %v934_v41  ;;  %v937_v49 = vsel %vm922_vm3, %v934_v41, %v936_v37  ;;  %v1643_v51 = vpop.f32.mrb[32].mxu0  ;;  %v2090_v19 = vsel %vm1019_vm2, %v1041_v8, %v1043_v4 }
 0x12e   : > { %v1113_v57 = vrot.slane %v1112_v45, 1  ;;  %v1116_v59 = vrot.slane %v1115_v46, 4  ;;  %v983_v60 = vadd.f32 %v935_v24, %v2027_v47  ;;  %v984_v61 = vadd.f32 %v937_v49, %v2031_v50  ;;  %v824_v32 = vpop.f32.mrb[33].mxu0 }
 0x12f   : > { %v833_v34 = vadd.f32 %v1643_v51, %v2050_v9  ;;  %v825_v2 = vadd.f32 %v2050_v9, %v824_v32  ;;  %v1644_v3 = vpop.f32.mrb[34].mxu0  ;;  %v2087_v47 = vsel %vm1019_vm2, %v1040_v53, %v1041_v8  ;;  %v1615_v20 = vpop.f32.mrb[32].mxu1 }
 0x130   : > { %v1117_v10 = vmax.f32 %v1115_v46, %v1116_v59  ;;  %v1080_v11 = vadd.f32 %v1032_v62, %v983_v60  ;;  %v1081_v6 = vadd.f32 %v1034_v63, %v984_v61  ;;  %v827_v7 = vpop.f32.mrb[35].mxu0  ;;  %v1114_v12 = vmax.f32 %v1112_v45, %v1113_v57  ;;  %v682_v63 = vpop.f32.mrb[33].mxu1 }
 0x131   : > { %v828_v13 = vadd.f32 %v2050_v9, %v827_v7  ;;  %v941_v16 = vrot.slane %v833_v34, 1  ;;  %v938_v17 = vrot.slane %v825_v2, 1  ;;  %v1045_v28 = vrot.slane %v682_v63, 2  ;;  %v1616_v29 = vpop.f32.mrb[34].mxu1 }
 0x132   : > { %v1118_v50 = vrot.slane %v1117_v10, 2  ;;  %v1096_v14 = vmax.f32 %v1080_v11, 0.0  ;;  %v1097_v15 = vmax.f32 %v1081_v6, 0.0  ;;  %v1164_v22 = vpack.c.bf16 %v1114_v12, %v1114_v12  ;;  %v685_v38 = vpop.f32.mrb[35].mxu1 }
 0x133   : > { %v939_v18 = vrot.slane %v828_v13, 1  ;;  %v1048_v46 = vrot.slane %v1615_v20, 2  ;;  %v1046_v23 = vrot.slane %v685_v38, 2 }
 0x134   : > { %v1119_v21 = vmax.f32 %v1117_v10, %v1118_v50  ;;  %v1122_v62 = vmax.f32 %v1096_v14, %v1097_v15  ;;  %v1203_v3 = vunpack.c.l.b16 %v1164_v22 }
 0x135   : > { %v940_v25 = vsel %vm922_vm3, %v938_v17, %v939_v18  ;;  %v942_v26 = vsel %vm922_vm3, %v939_v18, %v941_v16  ;;  %v1647_v27 = vpop.f32.mrb[36].mxu0  ;;  %v2105_v2 = vsel %vm1019_vm2, %v1046_v23, %v1048_v46 }
 0x136   : > { %v1120_v30 = vrot.slane %v1119_v21, 1  ;;  %v1123_v42 = vrot.slane %v1122_v62, 4  ;;  %v985_v33 = vadd.f32 %v940_v25, %v2035_v55  ;;  %v986_v35 = vadd.f32 %v942_v26, %v2039_v58  ;;  %v839_v37 = vpop.f32.mrb[37].mxu0 }
 0x137   : > { %v848_v41 = vadd.f32 %v1647_v27, %v2050_v9  ;;  %v840_v43 = vadd.f32 %v2050_v9, %v839_v37  ;;  %v1648_v45 = vpop.f32.mrb[38].mxu0  ;;  %v2102_v58 = vsel %vm1019_vm2, %v1045_v28, %v1046_v23 }
 0x138   : > { %v1121_v24 = vmax.f32 %v1119_v21, %v1120_v30  ;;  %v1124_v49 = vmax.f32 %v1122_v62, %v1123_v42  ;;  %v1082_v51 = vadd.f32 %v2074_v31, %v985_v33  ;;  %v1083_v53 = vadd.f32 %v2077_v39, %v986_v35  ;;  %v842_v54 = vpop.f32.mrb[39].mxu0  ;;  %v1619_v31 = vpop.f32.mrb[36].mxu1 }
 0x139   : > { %v843_v55 = vadd.f32 %v2050_v9, %v842_v54  ;;  %v946_v32 = vrot.slane %v848_v41, 1  ;;  %v943_v0 = vrot.slane %v840_v43, 1  ;;  %v697_v10 = vpop.f32.mrb[37].mxu1  ;;  %v1053_v12 = vrot.slane %v1619_v31, 2 }
 0x13a   : > { %v1165_v57 = vpack.c.bf16 %v1121_v24, %v1121_v24  ;;  %v1125_v59 = vrot.slane %v1124_v49, 2  ;;  %v1098_v60 = vmax.f32 %v1082_v51, 0.0  ;;  %v1099_v61 = vmax.f32 %v1083_v53, 0.0  ;;  %v1620_v50 = vpop.f32.mrb[38].mxu1 }
 0x13b   : > { %v944_v34 = vrot.slane %v843_v55, 1  ;;  %v1050_v13 = vrot.slane %v697_v10, 2  ;;  %v700_v20 = vpop.f32.mrb[39].mxu1 }
 0x13c   : > { %v1204_v39 = vunpack.c.l.b16 %v1165_v57  ;;  %v1126_v4 = vmax.f32 %v1124_v49, %v1125_v59  ;;  %v1129_v8 = vmax.f32 %v1098_v60, %v1099_v61  ;;  %v1051_v25 = vrot.slane %v700_v20, 2 }
 0x13d   : > { %v945_v11 = vsel %vm922_vm3, %v943_v0, %v944_v34  ;;  %v947_v6 = vsel %vm922_vm3, %v944_v34, %v946_v32  ;;  %v1651_v7 = vpop.f32.mrb[40].mxu0 }
 0x13e   : > { %v1212_v14 = vsel %vm1211_vm4, %v1204_v39, %v1203_v3  ;;  %v1127_v15 = vrot.slane %v1126_v4, 1  ;;  %v1130_v16 = vrot.slane %v1129_v8, 4  ;;  %v987_v17 = vadd.f32 %v945_v11, %v2041_v1  ;;  %v854_v18 = vpop.f32.mrb[41].mxu0 }
 0x13f   : > { %v988_v21 = vadd.f32 %v947_v6, %v2043_v5  ;;  %v863_v62 = vadd.f32 %v1651_v7, %v2050_v9  ;;  %v855_v63 = vadd.f32 %v2050_v9, %v854_v18  ;;  %v1652_v22 = vpop.f32.mrb[42].mxu0  ;;  %v1052_v37 = vsel %vm1019_vm2, %v1050_v13, %v1051_v25  ;;  %v1623_v46 = vpop.f32.mrb[40].mxu1 }
 0x140   : > { %v1128_v26 = vmax.f32 %v1126_v4, %v1127_v15  ;;  %v1131_v27 = vmax.f32 %v1129_v8, %v1130_v16  ;;  %v1084_v28 = vadd.f32 %v2087_v47, %v987_v17  ;;  %v857_v29 = vpop.f32.mrb[43].mxu0  ;;  %v1054_v45 = vsel %vm1019_vm2, %v1051_v25, %v1053_v12  ;;  %v712_v49 = vpop.f32.mrb[41].mxu1 }
 0x141   : > { %v1085_v30 = vadd.f32 %v2090_v19, %v988_v21  ;;  %v951_v42 = vrot.slane %v863_v62, 1  ;;  %v858_v1 = vadd.f32 %v2050_v9, %v857_v29  ;;  %v948_v41 = vrot.slane %v855_v63, 1  ;;  %v1624_v57 = vpop.f32.mrb[42].mxu1 }
 0x142   : > { %v1166_v33 = vpack.c.bf16 %v1128_v26, %v1128_v26  ;;  %v1132_v35 = vrot.slane %v1131_v27, 2  ;;  %v1100_v5 = vmax.f32 %v1084_v28, 0.0  ;;  %v1058_v24 = vrot.slane %v1623_v46, 2  ;;  %v715_v34 = vpop.f32.mrb[43].mxu1 }
 0x143   : > { %v1101_v38 = vmax.f32 %v1085_v30, 0.0  ;;  %v949_v43 = vrot.slane %v858_v1, 1  ;;  %v1055_v55 = vrot.slane %v712_v49, 2  ;;  %v1056_v8 = vrot.slane %v715_v34, 2 }
 0x144   : > { %v1205_v23 = vunpack.c.l.b16 %v1166_v33  ;;  %v1133_v47 = vmax.f32 %v1131_v27, %v1132_v35 }
 0x145   : > { %v1136_v51 = vmax.f32 %v1100_v5, %v1101_v38  ;;  %v950_v19 = vsel %vm922_vm3, %v948_v41, %v949_v43  ;;  %v952_v53 = vsel %vm922_vm3, %v949_v43, %v951_v42  ;;  %v1655_v54 = vpop.f32.mrb[44].mxu0  ;;  %v1057_v15 = vsel %vm1019_vm2, %v1055_v55, %v1056_v8 }
 0x146   : > { %v1214_v59 = vsel %vm1213_vm5, %v1205_v23, %v1212_v14  ;;  %v1134_v60 = vrot.slane %v1133_v47, 1  ;;  %v989_v61 = vadd.f32 %v950_v19, %v2017_v36  ;;  %v990_v32 = vadd.f32 %v952_v53, %v2021_v40  ;;  %v869_v0 = vpop.f32.mrb[45].mxu0 }
 0x147   : > { %v1137_v31 = vrot.slane %v1136_v51, 4  ;;  %v878_v3 = vadd.f32 %v1655_v54, %v2050_v9  ;;  %v870_v39 = vadd.f32 %v2050_v9, %v869_v0  ;;  %v1656_v4 = vpop.f32.mrb[46].mxu0  ;;  %v1059_v20 = vsel %vm1019_vm2, %v1056_v8, %v1058_v24 }
 0x148   : > { %v1135_v10 = vmax.f32 %v1133_v47, %v1134_v60  ;;  %v1086_v11 = vadd.f32 %v2102_v58, %v989_v61  ;;  %v1087_v6 = vadd.f32 %v2105_v2, %v990_v32  ;;  %v872_v7 = vpop.f32.mrb[47].mxu0 }
 0x149   : > { %v1138_v12 = vmax.f32 %v1136_v51, %v1137_v31  ;;  %v956_v36 = vrot.slane %v878_v3, 1  ;;  %v873_v40 = vadd.f32 %v2050_v9, %v872_v7  ;;  %v953_v17 = vrot.slane %v870_v39, 1 }
 0x14a   : > { %v1167_v13 = vpack.c.bf16 %v1135_v10, %v1135_v10  ;;  %v1102_v50 = vmax.f32 %v1086_v11, 0.0  ;;  %v1103_v14 = vmax.f32 %v1087_v6, 0.0 }
 0x14b   : > { %v1139_v16 = vrot.slane %v1138_v12, 2  ;;  %v954_v18 = vrot.slane %v873_v40, 1 }
 0x14c   : > { %v1206_v21 = vunpack.c.l.b16 %v1167_v13  ;;  %v1143_v58 = vmax.f32 %v1102_v50, %v1103_v14 }
 0x14d   : > { %v1140_v62 = vmax.f32 %v1138_v12, %v1139_v16  ;;  %v955_v2 = vsel %vm922_vm3, %v953_v17, %v954_v18  ;;  %v957_v63 = vsel %vm922_vm3, %v954_v18, %v956_v36  ;;  %v1659_v22 = vpop.f32.mrb[48].mxu0 }
 0x14e   : > { %v1216_v25 = vsel %vm1215_vm6, %v1206_v21, %v1214_v59  ;;  %v1144_v26 = vrot.slane %v1143_v58, 4  ;;  %v991_v27 = vadd.f32 %v955_v2, %v2025_v44  ;;  %v992_v28 = vadd.f32 %v957_v63, %v2029_v48  ;;  %v884_v29 = vpop.f32.mrb[49].mxu0 }
 0x14f   : > { %v1141_v30 = vrot.slane %v1140_v62, 1  ;;  %v893_v42 = vadd.f32 %v1659_v22, %v2050_v9  ;;  %v885_v1 = vadd.f32 %v2050_v9, %v884_v29  ;;  %v1660_v33 = vpop.f32.mrb[50].mxu0 }
 0x150   : > { %v1145_v35 = vmax.f32 %v1143_v58, %v1144_v26  ;;  %v1088_v5 = vadd.f32 %v1052_v37, %v991_v27  ;;  %v1089_v38 = vadd.f32 %v1054_v45, %v992_v28  ;;  %v887_v41 = vpop.f32.mrb[51].mxu0  ;;  %v1476_v58 = vld [vmem:[%s2197_s4] ss:$0 sm:$0xff] }
 0x151   : > { %v1142_v43 = vmax.f32 %v1140_v62, %v1141_v30  ;;  %v888_v46 = vadd.f32 %v2050_v9, %v887_v41  ;;  %v961_v49 = vrot.slane %v893_v42, 1  ;;  %v958_v48 = vrot.slane %v885_v1, 1 }
 0x152   : > { %v1146_v23 = vrot.slane %v1145_v35, 2  ;;  %v1104_v47 = vmax.f32 %v1088_v5, 0.0  ;;  %v1105_v24 = vmax.f32 %v1089_v38, 0.0 }
 0x153   : > { %v1168_v44 = vpack.c.bf16 %v1142_v43, %v1142_v43  ;;  %v959_v51 = vrot.slane %v888_v46, 1 }
 0x154   : > { %v1147_v19 = vmax.f32 %v1145_v35, %v1146_v23  ;;  %v1150_v53 = vmax.f32 %v1104_v47, %v1105_v24 }
 0x155   : > { %v1207_v54 = vunpack.c.l.b16 %v1168_v44  ;;  %v960_v55 = vsel %vm922_vm3, %v958_v48, %v959_v51  ;;  %v962_v37 = vsel %vm922_vm3, %v959_v51, %v961_v49 }
 0x156   : > { %v1148_v45 = vrot.slane %v1147_v19, 1  ;;  %v1151_v57 = vrot.slane %v1150_v53, 4  ;;  %v993_v59 = vadd.f32 %v960_v55, %v2033_v52  ;;  %v994_v9 = vadd.f32 %v962_v37, %v2037_v56 }
 0x157   : > { %v1218_v60 = vsel %vm1217_vm7, %v1207_v54, %v1216_v25 }
 0x158   : > { %v1149_v61 = vmax.f32 %v1147_v19, %v1148_v45  ;;  %v1152_v32 = vmax.f32 %v1150_v53, %v1151_v57  ;;  %v1090_v0 = vadd.f32 %v1057_v15, %v993_v59  ;;  %v1091_v34 = vadd.f32 %v1059_v20, %v994_v9 }
 0x15a   : > { %v1169_v31 = vpack.c.bf16 %v1149_v61, %v1149_v61  ;;  %v1153_v3 = vrot.slane %v1152_v32, 2  ;;  %v1106_v39 = vmax.f32 %v1090_v0, 0.0  ;;  %v1107_v4 = vmax.f32 %v1091_v34, 0.0 }
 0x15c   : > { %v1208_v8 = vunpack.c.l.b16 %v1169_v31  ;;  %v1154_v10 = vmax.f32 %v1152_v32, %v1153_v3  ;;  %v1157_v11 = vmax.f32 %v1106_v39, %v1107_v4 }
 0x15e   : > { %v1155_v6 = vrot.slane %v1154_v10, 1  ;;  %v1158_v7 = vrot.slane %v1157_v11, 4  ;;  %v1220_v12 = vsel %vm1219_vm8, %v1208_v8, %v1218_v60 }
 0x160   : > { %v1156_v36 = vmax.f32 %v1154_v10, %v1155_v6  ;;  %v1159_v52 = vmax.f32 %v1157_v11, %v1158_v7 }
 0x162   : > { %v1170_v56 = vpack.c.bf16 %v1156_v36, %v1156_v36  ;;  %v1160_v40 = vrot.slane %v1159_v52, 2 }
 0x164   : > { %v1209_v13 = vunpack.c.l.b16 %v1170_v56  ;;  %v1161_v50 = vmax.f32 %v1159_v52, %v1160_v40 }
 0x166   : > { %v1162_v14 = vrot.slane %v1161_v50, 1  ;;  %v1222_v15 = vsel %vm1221_vm9, %v1209_v13, %v1220_v12 }
 0x168   : > { %v1163_v16 = vmax.f32 %v1161_v50, %v1162_v14 }
 0x16a   : > { %v1171_v17 = vpack.c.bf16 %v1163_v16, %v1163_v16 }
 0x16c   : > { %v1210_v18 = vunpack.c.l.b16 %v1171_v17 }
 0x16e   : > { %v1224_v20 = vsel %vm1223_vm10, %v1210_v18, %v1222_v15 }
 0x16f   : > { %v1225_v21 = vpack.c.b16 %v1224_v20, %v1224_v20 }
 0x171   : > { %1678 = vmatmul.mubr.bf16.vlgmr.msra.gmra.mrb[44].mxu1 %v1225_v21 }
 0x244   : > { %v1309_v62 = vpop.f32.mrb[44].mxu1 }
 0x245   : > { %v1310_v2 = vadd.f32 %v1476_v58, %v1309_v62  ;;  %v1679_v63 = vpop.f32.mrb[45].mxu1 }
 0x246   : > { %v1312_v22 = vpop.f32.mrb[46].mxu1 }
 0x247   : > { %1315 = vst [vmem:[%s220_s13] sm:$0xff] %v1310_v2  ;;  %v1680_v25 = vpop.f32.mrb[47].mxu1 }
 0x248   : > { %1769 = shalt.err (!%p1766_p3)
}
 0x249   : > { %s1770_s6 = scalar_lea.hbm %s2151_s17, 128  ;;  %s1774_s9 = scalar_lea.hbm %s2198_s5, 256 }
 0x24a   : > { %p1771_p4 = scmp.ne.s32.totalorder %s2151_s17, %s1770_s6  ;;  %p1775_p9 = scmp.lt.u32.totalorder %s2151_s17, %s2198_s5 }
 0x24b   : > { %p1776_p10 = scmp.lt.u32.totalorder %s1774_s9, %s1770_s6  ;;  %p1778_p12 = scmp.lt.u32.totalorder %s1770_s6, %s2151_s17 }
 0x24c   : > { %p1772_p7 = pnand %p1771_p4, %p1891_p5 }
 0x24d   : > { %p1777_p11 = por %p1776_p10, %p1775_p9 }
 0x24e   : > { %p1773_p8 = pneg %p1772_p7 }
 0x24f   : > { %p1779_p13 = por %p1778_p12, %p1777_p11 }
 0x251   : > { %p1780_p0 = pnand %p1779_p13, %p1773_p8 }
 0x253   : > { %1783 = shalt.err (!%p1780_p0)
}
 0x254   : > { %1685 = dma.vmem_to_hbm [thread:$0]  (%p1891_p5), %s2153_s14, 128, %s2151_s17, %s1317_s23  }
 0x255 PF: > { %p1691_p1 = scmp.ge.s32.totalorder %s1818_s21, 2  ;;  %s1342_s12 = sand.u32 1, %s1806_s18  }
 0x256   : > { %s1343_s13 = scalar_lea.sflag [#allocation3], %s1342_s12 }
 0x257   : > { %p1688_p2 = pnand %p1691_p1, %p1895_p6 }
 0x259   : > { %1801 = dma.done.wait (!%p1688_p2), %s1343_s13, 128  }
 0x25a   : > { %1803 = vsyncadd (!%p1688_p2), %s1343_s13, 4294967168  ;;  %p15_p3 = scmp.ge.s32.totalorder %s1878_s24, 4   ;;  %s2201_s18 = smov %s1810_s19 }
 0x25b   : > { %s2202_s19 = smov %s1814_s20  ;;  %s2203_s20 = smov %s1889_s27 }
 0x25c   : > { %s2204_s21 = smov %s1878_s24  ;;  %17 = sbr.rel (!%p15_p3) target bundleno = 3 (0x3), region = 77 }
 0x263   :  { %1348 = vsyncpa [#allocation3], 1 }
 0x264   :  { %1350 = vsyncpa [#allocation3 + $0x1], 1 }

</bundles_post_ra>
